<compile_context>
chip_gen: v7x
topology: tpu7x:2x2x1
jax: 0.10.0
libtpu: 0.0.40
codegen_flags: <defaults>
</compile_context>

<pallas_src>
import functools

import jax
import jax.numpy as jnp
from jax.experimental import pallas as pl
from jax.experimental.pallas import tpu as pltpu


_VMEM_BYTES = 40 * 1024 * 1024   # v7x-safe; fine on v5e/v6e too.
_EPS_BN = 1e-5
_NEG_SLOPE = 0.2


def _round_up(x, m):
    return (x + m - 1) // m * m


# --------------------------------------------------------------------------
# Pallas kernels
# --------------------------------------------------------------------------

def _conv_bias_act_kernel(a_ref, w_ref, b_ref, y_ref, acc_ref, *, use_act,
                          neg_slope):
    """Tiled im2col conv: bf16 matmul + f32 accumulate; bias (+LeakyReLU) at k==last."""
    ki = pl.program_id(1)

    @pl.when(ki == 0)
    def _():
        acc_ref[...] = jnp.zeros_like(acc_ref)

    acc_ref[...] += jnp.dot(a_ref[...], w_ref[...],
                            preferred_element_type=jnp.float32)

    @pl.when(ki == pl.num_programs(1) - 1)
    def _():
        r = acc_ref[...] + b_ref[...]
        if use_act:
            r = jnp.where(r > 0, r, neg_slope * r)   # LeakyReLU(0.2)
        y_ref[...] = r


def _conv_stats_kernel(m_ref, a_ref, w_ref, y_ref, s1_ref, s2_ref, acc_ref, *,
                       tm):
    """Tiled conv (no bias) + per-channel sum / sum-of-squares for BatchNorm.

    s1/s2 are (1, Np) outputs resident across the whole grid (accumulated over
    the M tiles); padded rows (>= true M) are masked out of the statistics.
    """
    mi = pl.program_id(0)
    ki = pl.program_id(1)

    @pl.when((mi == 0) & (ki == 0))
    def _():
        s1_ref[...] = jnp.zeros_like(s1_ref)
        s2_ref[...] = jnp.zeros_like(s2_ref)

    @pl.when(ki == 0)
    def _():
        acc_ref[...] = jnp.zeros_like(acc_ref)

    acc_ref[...] += jnp.dot(a_ref[...], w_ref[...],
                            preferred_element_type=jnp.float32)

    @pl.when(ki == pl.num_programs(1) - 1)
    def _():
        r = acc_ref[...]
        y_ref[...] = r
        row = mi * tm + jax.lax.broadcasted_iota(jnp.int32, r.shape, 0)
        valid = (row < m_ref[0, 0]).astype(jnp.float32)
        rm = r * valid
        s1_ref[...] += jnp.sum(rm, axis=0, keepdims=True)
        s2_ref[...] += jnp.sum(rm * rm, axis=0, keepdims=True)


def _bn_act_kernel(m_ref, y_ref, s1_ref, s2_ref, g_ref, b_ref, o_ref, *, eps,
                   neg_slope):
    """Apply training-mode BatchNorm (batch statistics) + LeakyReLU(0.2)."""
    m = m_ref[0, 0].astype(jnp.float32)
    mean = s1_ref[...] / m
    var = jnp.maximum(s2_ref[...] / m - mean * mean, 0.0)
    inv = jax.lax.rsqrt(var + eps)
    r = (y_ref[...] - mean) * inv * g_ref[...] + b_ref[...]
    o_ref[...] = jnp.where(r > 0, r, neg_slope * r)


# --------------------------------------------------------------------------
# Pallas wrappers
# --------------------------------------------------------------------------

def _pick_tiles(M, K):
    TM = min(_round_up(M, 8), 256)          # MXU-friendly when M is large
    Mp = _round_up(M, TM)
    Kr = _round_up(K, 128)
    TK = Kr if Kr <= 512 else 512
    Kp = _round_up(Kr, TK)
    return TM, Mp, TK, Kp


def _conv_layer(A, Wmat, bias, gamma, beta, *, use_bn, use_act):
    """One discriminator conv layer as tiled Pallas calls."""
    M, K = A.shape
    N = Wmat.shape[1]
    Np = _round_up(N, 128)
    TM, Mp, TK, Kp = _pick_tiles(M, K)
    num_m, num_k = Mp // TM, Kp // TK

    # One-time pad + bf16 cast of the matmul operands (no-op when aligned).
    A_p = jnp.zeros((Mp, Kp), jnp.bfloat16).at[:M, :K].set(A.astype(jnp.bfloat16))
    W_p = jnp.zeros((Kp, Np), jnp.bfloat16).at[:K, :N].set(Wmat.astype(jnp.bfloat16))

    a_spec = pl.BlockSpec((TM, TK), lambda mi, ki: (mi, ki))
    w_spec = pl.BlockSpec((TK, Np), lambda mi, ki: (ki, 0))
    y_spec = pl.BlockSpec((TM, Np), lambda mi, ki: (mi, 0))
    col_spec = pl.BlockSpec((1, Np), lambda mi, ki: (0, 0))

    if not use_bn:
        b_p = jnp.zeros((1, Np), jnp.float32)
        if bias is not None:
            b_p = b_p.at[0, :N].set(bias)
        y = pl.pallas_call(
            functools.partial(_conv_bias_act_kernel, use_act=use_act,
                              neg_slope=_NEG_SLOPE),
            out_shape=jax.ShapeDtypeStruct((Mp, Np), jnp.float32),
            grid=(num_m, num_k),
            in_specs=[a_spec, w_spec, col_spec],
            out_specs=y_spec,
            scratch_shapes=[pltpu.VMEM((TM, Np), jnp.float32)],
            compiler_params=pltpu.CompilerParams(
                dimension_semantics=("parallel", "arbitrary"),
                vmem_limit_bytes=_VMEM_BYTES),
        )(A_p, W_p, b_p)
        return y[:M, :N]

    # BN layer, pass 1: tiled conv + per-channel s1/s2 accumulation.
    mcount = jnp.array([[M]], dtype=jnp.int32)
    y, s1, s2 = pl.pallas_call(
        functools.partial(_conv_stats_kernel, tm=TM),
        out_shape=(jax.ShapeDtypeStruct((Mp, Np), jnp.float32),
                   jax.ShapeDtypeStruct((1, Np), jnp.float32),
                   jax.ShapeDtypeStruct((1, Np), jnp.float32)),
        grid=(num_m, num_k),
        in_specs=[pl.BlockSpec(memory_space=pltpu.MemorySpace.SMEM),
                  a_spec, w_spec],
        out_specs=(y_spec,
                   pl.BlockSpec((1, Np), lambda mi, ki: (0, 0)),
                   pl.BlockSpec((1, Np), lambda mi, ki: (0, 0))),
        scratch_shapes=[pltpu.VMEM((TM, Np), jnp.float32)],
        compiler_params=pltpu.CompilerParams(
            # M axis must stay "arbitrary": s1/s2 accumulate across M tiles.
            dimension_semantics=("arbitrary", "arbitrary"),
            vmem_limit_bytes=_VMEM_BYTES),
    )(mcount, A_p, W_p)

    # BN layer, pass 2: apply normalization + LeakyReLU, M tiles in parallel.
    g_p = jnp.zeros((1, Np), jnp.float32).at[0, :N].set(gamma)
    bb_p = jnp.zeros((1, Np), jnp.float32).at[0, :N].set(beta)
    out = pl.pallas_call(
        functools.partial(_bn_act_kernel, eps=_EPS_BN, neg_slope=_NEG_SLOPE),
        out_shape=jax.ShapeDtypeStruct((Mp, Np), jnp.float32),
        grid=(num_m,),
        in_specs=[pl.BlockSpec(memory_space=pltpu.MemorySpace.SMEM),
                  pl.BlockSpec((TM, Np), lambda mi: (mi, 0)),
                  pl.BlockSpec((1, Np), lambda mi: (0, 0)),
                  pl.BlockSpec((1, Np), lambda mi: (0, 0)),
                  pl.BlockSpec((1, Np), lambda mi: (0, 0)),
                  pl.BlockSpec((1, Np), lambda mi: (0, 0))],
        out_specs=pl.BlockSpec((TM, Np), lambda mi: (mi, 0)),
        compiler_params=pltpu.CompilerParams(
            dimension_semantics=("parallel",),
            vmem_limit_bytes=_VMEM_BYTES),
    )(mcount, y, s1, s2, g_p, bb_p)
    return out[:M, :N]


# --------------------------------------------------------------------------
# PatchGAN discriminator built from the Pallas conv kernels
# --------------------------------------------------------------------------

def init_discriminator_params(key, input_nc=7, ndf=64, n_layers=3):
    """Mirror NLayerDiscriminator_condtion.__init__ (BatchNorm2d -> bias=False)."""
    cfg = [dict(cin=input_nc, cout=ndf, stride=2,
                use_bias=True, use_bn=False, use_act=True)]
    nf_mult = 1
    for n in range(1, n_layers):
        nf_prev, nf_mult = nf_mult, min(2 ** n, 8)
        cfg.append(dict(cin=ndf * nf_prev, cout=ndf * nf_mult, stride=2,
                        use_bias=False, use_bn=True, use_act=True))
    nf_prev, nf_mult = nf_mult, min(2 ** n_layers, 8)
    cfg.append(dict(cin=ndf * nf_prev, cout=ndf * nf_mult, stride=1,
                    use_bias=False, use_bn=True, use_act=True))
    cfg.append(dict(cin=ndf * nf_mult, cout=1, stride=1,
                    use_bias=True, use_bn=False, use_act=False))

    params = []
    for c in cfg:
        key, k1, k2, k3 = jax.random.split(key, 4)
        W = 0.02 * jax.random.normal(k1, (c['cout'], c['cin'], 4, 4), jnp.float32)
        b = (0.02 * jax.random.normal(k3, (c['cout'],), jnp.float32)
             if c['use_bias'] else None)
        if c['use_bn']:
            gamma = 1.0 + 0.02 * jax.random.normal(k2, (c['cout'],), jnp.float32)
            beta = jnp.zeros((c['cout'],), jnp.float32)
        else:
            gamma = beta = None
        params.append(dict(W=W, b=b, gamma=gamma, beta=beta, **c))
    return params


def _im2col_nhwc(x, k, stride, pad):
    """Patch extraction (XLA glue). Patch feature order is (kh, kw, cin)."""
    B, H, W, C = x.shape
    xp = jnp.pad(x, ((0, 0), (pad, pad), (pad, pad), (0, 0)))
    Ho = (H + 2 * pad - k) // stride + 1
    Wo = (W + 2 * pad - k) // stride + 1
    cols = []
    for i in range(k):
        for j in range(k):
            cols.append(xp[:, i:i + (Ho - 1) * stride + 1:stride,
                           j:j + (Wo - 1) * stride + 1:stride, :])
    return jnp.concatenate(cols, axis=-1), Ho, Wo


def discriminator_forward(params, x_nchw):
    """self.main(input); input NCHW, output NCHW logits."""
    x = jnp.transpose(x_nchw, (0, 2, 3, 1)).astype(jnp.float32)  # NCHW -> NHWC
    for p in params:
        patches, Ho, Wo = _im2col_nhwc(x, 4, p['stride'], 1)
        B = patches.shape[0]
        A = patches.reshape(B * Ho * Wo, -1)
        # torch weight (Cout, Cin, kh, kw) -> (kh, kw, Cin, Cout) -> (K, N)
        W2 = jnp.transpose(p['W'], (2, 3, 1, 0)).reshape(-1, p['W'].shape[0])
        out = _conv_layer(A, W2, p['b'], p['gamma'], p['beta'],
                          use_bn=p['use_bn'], use_act=p['use_act'])
        x = out.reshape(B, Ho, Wo, -1)
    return jnp.transpose(x, (0, 3, 1, 2))                        # NHWC -> NCHW


def nlayer_discriminator_condition_forward(params, inp, cond):
    """NLayerDiscriminator_condtion.forward(input, cond)."""
    r = inp.shape[-1] // cond.shape[-1]
    cond_tiled = jnp.tile(cond, (1, 1, r, r))        # cond.repeat(1, 1, r, r)
    x = jnp.concatenate([inp.astype(jnp.float32),
                         cond_tiled.astype(jnp.float32)], axis=1)
    return discriminator_forward(params, x)


# --------------------------------------------------------------------------
# Pure-JAX reference (mirrors the kernel math: bf16 matmul, f32 accumulation)
# --------------------------------------------------------------------------

def reference_forward(params, inp, cond):
    r = inp.shape[-1] // cond.shape[-1]
    x = jnp.concatenate([inp, jnp.tile(cond, (1, 1, r, r))], axis=1)
    x = jnp.transpose(x.astype(jnp.float32), (0, 2, 3, 1))
    for p in params:
        patches, Ho, Wo = _im2col_nhwc(x, 4, p['stride'], 1)
        B = patches.shape[0]
        A = patches.reshape(B * Ho * Wo, -1)
        W2 = jnp.transpose(p['W'], (2, 3, 1, 0)).reshape(-1, p['W'].shape[0])
        y = jnp.dot(A.astype(jnp.bfloat16), W2.astype(jnp.bfloat16),
                    preferred_element_type=jnp.float32)
        if p['use_bias']:
            y = y + p['b'][None, :]
        if p['use_bn']:
            mean = jnp.mean(y, axis=0, keepdims=True)
            var = jnp.maximum(jnp.mean(y * y, axis=0, keepdims=True)
                              - mean * mean, 0.0)
            y = ((y - mean) * jax.lax.rsqrt(var + _EPS_BN)
                 * p['gamma'][None, :] + p['beta'][None, :])
        if p['use_act']:
            y = jnp.where(y > 0, y, _NEG_SLOPE * y)
        x = y.reshape(B, Ho, Wo, -1)
    return jnp.transpose(x, (0, 3, 1, 2))


if __name__ == "__main__":
    key = jax.random.PRNGKey(0)
    k_img, k_cond, k_par = jax.random.split(key, 3)

    # spatial=32 so all five 4x4 convs produce valid outputs; cond 8x8 -> x4 tile
    B = 2
    img = jax.random.normal(k_img, (B, 3, 32, 32), jnp.float32)
    cond = jax.random.normal(k_cond, (B, 4, 8, 8), jnp.float32)
    params = init_discriminator_params(k_par, input_nc=7, ndf=64, n_layers=3)

    logits = nlayer_discriminator_condition_forward(params, img, cond)
    logits = jax.block_until_ready(logits)

    assert logits.shape == (B, 1, 2, 2), logits.shape
    assert bool(jnp.all(jnp.isfinite(logits)))

    ref = reference_forward(params, img, cond)
    err = float(jnp.max(jnp.abs(logits - ref)))
    scale = max(1.0, float(jnp.max(jnp.abs(ref))))
    assert err <= 5e-2 * scale, f"max abs err {err} (scale {scale})"

    print("KERNEL_OK")
</pallas_src>

<mosaic_0001>
module attributes {stable_mosaic.version = 11 : i64} {
  func.func @_conv_bias_act_kernel(%arg0: i32, %arg1: i32, %arg2: memref<256x128xbf16, #tpu.memory_space<vmem>>, %arg3: memref<128x128xbf16, #tpu.memory_space<vmem>>, %arg4: memref<1x128xf32, #tpu.memory_space<vmem>>, %arg5: memref<256x128xf32, #tpu.memory_space<vmem>>, %arg6: memref<256x128xf32, #tpu.memory_space<vmem>>) attributes {dimension_semantics = [#tpu.dimension_semantics<parallel>, #tpu.dimension_semantics<arbitrary>], iteration_bounds = array<i64: 2, 1>, scalar_prefetch = 0 : i64, scratch_operands = 1 : i64, tpu.core_type = #tpu.core_type<tc>, window_params = [{transform_indices = @transform_0, window_bounds = array<i64: 256, 128>}, {transform_indices = @transform_1, window_bounds = array<i64: 128, 128>}, {pipeline_mode = #tpu.pipeline_mode<synchronous>, transform_indices = @transform_2, window_bounds = array<i64: 1, 128>}, {transform_indices = @transform_3, window_bounds = array<i64: 256, 128>}]} {
    %c0_i32 = arith.constant 0 : i32
    %0 = arith.cmpi eq, %arg1, %c0_i32 : i32
    %1 = arith.extui %0 : i1 to i32
    %c0_i32_0 = arith.constant 0 : i32
    %2 = arith.cmpi ne, %1, %c0_i32_0 : i32
    scf.if %2 {
      %cst_10 = arith.constant 0.000000e+00 : f32
      %12 = vector.broadcast %cst_10 : f32 to vector<256x128xf32>
      %c0_11 = arith.constant 0 : index
      %c0_12 = arith.constant 0 : index
      %13 = vector.load %arg6[%c0_11, %c0_12] : memref<256x128xf32, #tpu.memory_space<vmem>>, vector<256x128xf32>
      tpu.vector_store %arg6[%c0_11, %c0_12], %12 {strides = array<i32>} : memref<256x128xf32, #tpu.memory_space<vmem>>, vector<256x128xf32>,
    } else {
    }
    %c0 = arith.constant 0 : index
    %c0_1 = arith.constant 0 : index
    %3 = vector.load %arg6[%c0, %c0_1] : memref<256x128xf32, #tpu.memory_space<vmem>>, vector<256x128xf32>
    %c0_2 = arith.constant 0 : index
    %c0_3 = arith.constant 0 : index
    %4 = vector.load %arg2[%c0_2, %c0_3] : memref<256x128xbf16, #tpu.memory_space<vmem>>, vector<256x128xbf16>
    %c0_4 = arith.constant 0 : index
    %c0_5 = arith.constant 0 : index
    %5 = vector.load %arg3[%c0_4, %c0_5] : memref<128x128xbf16, #tpu.memory_space<vmem>>, vector<128x128xbf16>
    %cst = arith.constant dense<0.000000e+00> : vector<256x128xf32>
    %6 = tpu.matmul %4, %5, %cst {dimension_numbers = #tpu.dot_dimension_numbers<[1], [0], [0], [1], [0, 0, 1, 1], [], []>} : vector<256x128xbf16>, vector<128x128xbf16>, vector<256x128xf32> -> vector<256x128xf32>
    %7 = arith.addf %3, %6 : vector<256x128xf32>
    %c0_6 = arith.constant 0 : index
    %c0_7 = arith.constant 0 : index
    %8 = vector.load %arg6[%c0_6, %c0_7] : memref<256x128xf32, #tpu.memory_space<vmem>>, vector<256x128xf32>
    tpu.vector_store %arg6[%c0_6, %c0_7], %7 {strides = array<i32>} : memref<256x128xf32, #tpu.memory_space<vmem>>, vector<256x128xf32>,
    %c0_i32_8 = arith.constant 0 : i32
    %9 = arith.cmpi eq, %arg1, %c0_i32_8 : i32
    %10 = arith.extui %9 : i1 to i32
    %c0_i32_9 = arith.constant 0 : i32
    %11 = arith.cmpi ne, %10, %c0_i32_9 : i32
    scf.if %11 {
      %c0_10 = arith.constant 0 : index
      %c0_11 = arith.constant 0 : index
      %12 = vector.load %arg6[%c0_10, %c0_11] : memref<256x128xf32, #tpu.memory_space<vmem>>, vector<256x128xf32>
      %c0_12 = arith.constant 0 : index
      %c0_13 = arith.constant 0 : index
      %13 = vector.load %arg4[%c0_12, %c0_13] : memref<1x128xf32, #tpu.memory_space<vmem>>, vector<1x128xf32>
      %14 = vector.broadcast %13 : vector<1x128xf32> to vector<256x128xf32>
      %15 = arith.addf %12, %14 : vector<256x128xf32>
      %cst_14 = arith.constant 0.000000e+00 : f32
      %16 = vector.broadcast %cst_14 : f32 to vector<256x128xf32>
      %17 = arith.cmpf ogt, %15, %16 : vector<256x128xf32>
      %cst_15 = arith.constant 2.000000e-01 : f32
      %18 = vector.broadcast %cst_15 : f32 to vector<256x128xf32>
      %19 = arith.mulf %18, %15 : vector<256x128xf32>
      %20 = arith.select %17, %15, %19 : vector<256x128xi1>, vector<256x128xf32>
      %c0_16 = arith.constant 0 : index
      %c0_17 = arith.constant 0 : index
      %21 = vector.load %arg5[%c0_16, %c0_17] : memref<256x128xf32, #tpu.memory_space<vmem>>, vector<256x128xf32>
      tpu.vector_store %arg5[%c0_16, %c0_17], %20 {strides = array<i32>} : memref<256x128xf32, #tpu.memory_space<vmem>>, vector<256x128xf32>,
    } else {
    }
    return
  }
  func.func @transform_0(%arg0: i32, %arg1: i32) -> (i32, i32) {
    %c0_i32 = arith.constant 0 : i32
    return %arg0, %arg1 : i32, i32
  }
  func.func @transform_1(%arg0: i32, %arg1: i32) -> (i32, i32) {
    %c0_i32 = arith.constant 0 : i32
    %c0_i32_0 = arith.constant 0 : i32
    return %arg1, %c0_i32 : i32, i32
  }
  func.func @transform_2(%arg0: i32, %arg1: i32) -> (i32, i32) {
    %c0_i32 = arith.constant 0 : i32
    %c0_i32_0 = arith.constant 0 : i32
    %c0_i32_1 = arith.constant 0 : i32
    return %c0_i32, %c0_i32_0 : i32, i32
  }
  func.func @transform_3(%arg0: i32, %arg1: i32) -> (i32, i32) {
    %c0_i32 = arith.constant 0 : i32
    %c0_i32_0 = arith.constant 0 : i32
    return %arg0, %c0_i32 : i32, i32
  }
}

</mosaic_0001>

<bundles_post_ra>
// kernel: tpu_custom_call.1
= control target key start
LH: loop header
LB: loop body
LE: loop exit
PB: predicated region body
PF: predicated region fallthrough
CT: control target
= control target key end

     0   :  { %8 = vsyncpa [#allocation4], 0  ;;  %s1749_s0 = inlined_call_operand.hbm [shape: bf16[512,128], index: 0, kind: input, shape index: {}]   ;;  %s1750_s1 = inlined_call_operand.hbm [shape: bf16[128,128], index: 1, kind: input, shape index: {}]   ;;  %s1751_s2 = inlined_call_operand.vmem [shape: f32[1,128], index: 2, kind: input, shape index: {}]   ;;  %s1752_s3 = inlined_call_operand.hbm [shape: f32[512,128], index: 3, kind: output, shape index: {}]  }
   0x1   :  { %10 = vsyncpa [#allocation4 + $0x1], 0 }
   0x2   :  { %11 = vsyncpa [#allocation7], 0 }
   0x3   :  { %12 = vsyncpa [#allocation5], 0 }
   0x4   :  { %14 = vsyncpa [#allocation5 + $0x1], 0  ;;  %s1433_s12 = smov 0   ;;  %s1435_s13 = smov 0  }
   0x5   :  { %s1437_s14 = smov 0   ;;  %s1439_s15 = smov 0  }
   0x6   :  { %s1441_s16 = smov 0   ;;  %s1443_s17 = smov 0  }
   0x7 LB: > { %s1027_s18 = sadd.s32 4294967295, %s1404_s17   ;;  %s1028_s19 = sadd.s32 4294967294, %s1404_s17   ;;  %s1404_s17 = sphi %s1443_s17, %s20_s17   ;;  %s1400_s16 = sphi %s1441_s16, %s1776_s16   ;;  %s1396_s15 = sphi %s1439_s15, %s1775_s15   ;;  %s1392_s14 = sphi %s1437_s14, %s1774_s14   ;;  %s1388_s13 = sphi %s1435_s13, %s1773_s13   ;;  %s1384_s12 = sphi %s1433_s12, %s1772_s12  }
   0x8   : > { %p54_p0 = scmp.ne.s32.totalorder %s1388_s13, %s1384_s12  ;;  %p1467_p1 = scmp.eq.s32.totalorder %s1027_s18, 0 }
   0x9   : > { %p1471_p2 = scmp.eq.s32.totalorder %s1027_s18, 1  ;;  %p131_p3 = scmp.eq.s32.totalorder %s1028_s19, 1 }
   0xa   : > { %s1757_s20 = scalar_select %p1467_p1, 1, 0 }
   0xb   : > { %s1758_s21 = scalar_select %p1471_p2, 1, 0 }
   0xc   : > { %p1477_p4 = por %p1467_p1, %p54_p0  ;;  %p1029_p5 = scmp.ge.s32.totalorder %s1404_s17, 1 }
   0xd   : > { %p1482_p6 = por %p131_p3, %p54_p0  ;;  %p138_p7 = scmp.lt.s32.totalorder %s1404_s17, 3 }
   0xe   : > { %s1759_s22 = scalar_select %p1477_p4, 1, 0 }
   0xf   : > { %s1760_s23 = scalar_select %p1482_p6, 1, 0 }
  0x10   : > { %p1487_p8 = pnand %p1029_p5, %p138_p7  ;;  %s1406_s25 = smov [#allocation6]  }
  0x11   : > { %s153_s26 = sshll.u32 %s1406_s25, 4  ;;  %s32_s28 = sadd.s32 1, %s1400_s16  ;;  %s154_s26 = int_to_ptr.vmem [resolvable:$true] %s153_s26 }
  0x12   : > { %s1761_s24 = scalar_select %p1487_p8, 1, 0 }
  0x13   : > { %p1167_p9 = pneg %p1487_p8  ;;  %s1260_s4 = scalar_lea.hbm %s1750_s1, 1024 }
  0x14   : > { %p1261_p12 = scmp.ne.s32.totalorder %s1750_s1, %s1260_s4  ;;  %p1267_p5 = scmp.lt.u32.totalorder %s1260_s4, %s1750_s1 }
  0x15   : > { %p1496_p11 = pnand %p1167_p9, %p1467_p1 }
  0x17   : > { %p1262_p13 = pneg %p1496_p11 }
  0x19   : > { %p1263_p0 = pnand %p1262_p13, %p1261_p12 }
  0x1b   : > { %p1264_p3 = pneg %p1263_p0 }
  0x1d   : > { %p1269_p7 = pnand %p1267_p5, %p1264_p3 }
  0x1f   : > { %1272 = shalt.err (!%p1269_p7)
}
  0x20   : > { %s1273_s9 = scalar_lea.vmem %s154_s26, 1024  ;;  %p1281_p1 = scmp.lt.s32.totalorder %s154_s26, %s154_s26 }
  0x21   : > { %p1274_p9 = scmp.ne.s32.totalorder %s154_s26, %s1273_s9  ;;  %p1282_p4 = scmp.lt.s32.totalorder %s1273_s9, %s1273_s9 }
  0x23   : > { %p1276_p10 = pnand %p1274_p9, %p1262_p13  ;;  %p1283_p8 = por %p1282_p4, %p1281_p1 }
  0x25   : > { %p1277_p6 = pneg %p1276_p10 }
  0x27   : > { %p1284_p2 = pnand %p1283_p8, %p1277_p6 }
  0x29   : > { %1287 = shalt.err (!%p1284_p2)
}
  0x2a   : > { %s1407_s10 = smov 64   ;;  %s1408_s11 = smov 4  }
  0x2b   : > { %1170 = dma.hbm_to_vmem [thread:$0]  (!%p1496_p11), %s1750_s1, 1024, %s154_s26, [#allocation7], %s1407_s10, %s1407_s10, %s1408_s11  }
  0x2c   : > { %p34_p1 = scmp.ge.s32.totalorder %s32_s28, 2  ;;  %s41_s25 = sadd.s32 1, %s1392_s14 }
  0x2d   : > { %p48_p2 = scmp.ne.s32.totalorder %s1392_s14, %s1388_s13  ;;  %p49_p4 = scmp.eq.s32.totalorder %s1404_s17, 0 }
  0x2e   : > { %s1778_s28 = smov (%p34_p1, %s32_s28), 0  ;;  %p1764_p8 = scmp.ne.s32.totalorder %s1758_s21, 0 }
  0x2f   : > { %p1526_p6 = por %p49_p4, %p48_p2  ;;  %s36_s30 = ssub.s32 %s1400_s16, %s1778_s28 }
  0x30   : > { %p1532_p10 = por %p1764_p8, %p48_p2  ;;  %p1180_p12 = scmp.lt.s32.totalorder %s1404_s17, 2 }
  0x31   : > { %p39_p11 = scmp.eq.s32.totalorder %s36_s30, 0  ;;  %s170_s26 = sand.u32 1, %s1392_s14  }
  0x32   : > { %s1032_s4 = sshll.u32 %s170_s26, 7  ;;  %s1069_s6 = sshll.u32 %s1400_s16, 11 }
  0x33   : > { %s1541_s5 = scalar_select %p39_p11, %s1392_s14, %s41_s25  }
  0x34   : > { %s1547_s9 = scalar_lea.hbm %s1749_s0, %s1069_s6  ;;  %s174_s21 = scalar_lea.vmem [#allocation3], %s1032_s4 }
  0x35   : > { %s182_s18 = sshll.u32 %s174_s21, 4  ;;  %p1553_p13 = pnand %p1180_p12, %p1526_p6  ;;  %s1549_s18 = int_to_ptr.vmem [resolvable:$true] %s182_s18 }
  0x36   : > { %s1557_s25 = scalar_lea.sflag [#allocation4], %s170_s26  ;;  %s1288_s30 = scalar_lea.hbm %s1547_s9, 2048 }
  0x37   : > { %p1289_p0 = scmp.ne.s32.totalorder %s1547_s9, %s1288_s30  ;;  %p1290_p3 = pneg %p1553_p13 }
  0x38   : > { %s1293_s29 = scalar_lea.hbm %s1749_s0, 4096  ;;  %p1294_p9 = scmp.lt.u32.totalorder %s1547_s9, %s1749_s0 }
  0x39   : > { %p1291_p5 = pnand %p1290_p3, %p1289_p0  ;;  %p1295_p1 = scmp.lt.u32.totalorder %s1293_s29, %s1288_s30 }
  0x3a   : > { %p1297_p4 = scmp.lt.u32.totalorder %s1288_s30, %s1547_s9 }
  0x3b   : > { %p1292_p7 = pneg %p1291_p5  ;;  %p1296_p2 = por %p1295_p1, %p1294_p9 }
  0x3d   : > { %p1298_p6 = por %p1297_p4, %p1296_p2 }
  0x3f   : > { %p1299_p8 = pnand %p1298_p6, %p1292_p7 }
  0x41   : > { %1302 = shalt.err (!%p1299_p8)
}
  0x42   : > { %s1303_s26 = scalar_lea.vmem %s1549_s18, 2048  ;;  %s1409_s21 = smov [#allocation3]  }
  0x43   : > { %p1304_p12 = scmp.ne.s32.totalorder %s1549_s18, %s1303_s26  ;;  %s1308_s4 = sshll.u32 %s1409_s21, 4  ;;  %s1309_s4 = int_to_ptr.vmem [resolvable:$false] %s1308_s4 }
  0x44   : > { %s1310_s6 = scalar_lea.vmem %s1309_s4, 4096  ;;  %p1311_p5 = scmp.lt.s32.totalorder %s1549_s18, %s1309_s4 }
  0x45   : > { %p1306_p11 = pnand %p1304_p12, %p1290_p3  ;;  %p1312_p9 = scmp.lt.s32.totalorder %s1310_s6, %s1303_s26 }
  0x47   : > { %p1307_p0 = pneg %p1306_p11  ;;  %p1313_p1 = por %p1312_p9, %p1311_p5 }
  0x49   : > { %p1314_p2 = pnand %p1313_p1, %p1307_p0 }
  0x4b   : > { %1317 = shalt.err (!%p1314_p2)
}
  0x4c   : > { %1174 = dma.hbm_to_vmem [thread:$0]  (!%p1553_p13), %s1547_s9, 2048, %s1549_s18, %s1557_s25, %s1407_s10, %s1407_s10, %s1408_s11  }
  0x4d   : > { %p1767_p3 = scmp.ne.s32.totalorder %s1761_s24, 0 }
  0x4e   : > { %s1591_s30 = sand.u32 (!%p1767_p3), 1, %s1388_s13   ;;  %p1768_p7 = scmp.ne.s32.totalorder (!%p1767_p3), %s1759_s22, 0 }
  0x4f   : > { %194 = sbr.rel (%p1767_p3) target bundleno = 386 (0x182), region = 32  ;;  %s1036_s29 = sshll.u32 (!%p1767_p3), %s1591_s30, 7 }
  0x50   : > { %s197_s7 = scalar_lea.sflag (!%p1767_p3), [#allocation4], %s1591_s30  ;;  %s1595_s8 = scalar_lea.vmem (!%p1767_p3), [#allocation3], %s1036_s29 }
  0x56   : > { %1371 = dma.done.wait (%p1768_p7), %s197_s7, 2048  }
  0x57   : > { %1373 = vsyncadd (%p1768_p7), %s197_s7, 4294965248  ;;  %p1769_p13 = scmp.ne.s32.totalorder %s1757_s20, 0 }
  0x59   : > { %1375 = dma.done.wait (%p1769_p13), [#allocation7], 1024  }
  0x5a   : > { %1377 = vsyncadd (%p1769_p13), [#allocation7], 4294966272  ;;  %v1236_v0 = vld [vmem:[#allocation6] sm:$0xff]   ;;  %v1237_v1 = vld [vmem:[#allocation6 + $0x8] sm:$0xff]   ;;  %s1038_s24 = sshll.u32 %s1591_s30, 8  ;;  %s1070_s11 = sshll.u32 %s1396_s15, 12 }
  0x5b   : > { %1095 = vmatprep.subr.bf16.mxu0 %v1236_v0  ;;  %1143 = vmatprep.subr.bf16.mxu1 %v1236_v0  ;;  %v1238_v2 = vld [vmem:[#allocation6 + $0x10] sm:$0xff]   ;;  %v1239_v3 = vld [vmem:[#allocation6 + $0x18] sm:$0xff]   ;;  %v1244_v4 = vld [vmem:[%s1595_s8] sm:$0xff]   ;;  %s1633_s10 = scalar_lea.vmem [#allocation8], %s1038_s24  ;;  %s1694_s19 = scalar_lea.hbm %s1752_s3, %s1070_s11 }
  0x5c   : > { %1096 = vmatpush3.bf16.msra.mxu0 %v1236_v0  ;;  %1151 = vmatpush3.bf16.msra.mxu1 %v1236_v0  ;;  %v1245_v5 = vld [vmem:[%s1595_s8 + $0x40] sm:$0xff]   ;;  %v1241_v7 = vld [vmem:[#allocation6 + $0x28] sm:$0xff]   ;;  %v1242_v8 = vld [vmem:[#allocation6 + $0x30] sm:$0xff]   ;;  %s932_s9 = sshll.u32 %s1633_s10, 4  ;;  %s919_s25 = scalar_lea.sflag [#allocation5], %s1591_s30  ;;  %s1696_s9 = int_to_ptr.vmem [resolvable:$true] %s932_s9 }
  0x5d   : > { %1097 = vmatprep.subr.bf16.mxu0 %v1237_v1  ;;  %1144 = vmatprep.subr.bf16.mxu1 %v1237_v1  ;;  %v1240_v6 = vld [vmem:[#allocation6 + $0x20] sm:$0xff]   ;;  %v1243_v9 = vld [vmem:[#allocation6 + $0x38] sm:$0xff]   ;;  %v1246_v10 = vld [vmem:[%s1595_s8 + $0x8] sm:$0xff]   ;;  %s1318_s26 = scalar_lea.vmem %s1696_s9, 4096  ;;  %s1410_s21 = smov [#allocation8]  }
  0x5e   : > { %1111 = vmatprep.mubr.bf16.mxu0 %v1244_v4  ;;  %1127 = vmatprep.mubr.bf16.mxu1 %v1245_v5  ;;  %v1247_v11 = vld [vmem:[%s1595_s8 + $0x48] sm:$0xff]   ;;  %v1248_v12 = vld [vmem:[%s1595_s8 + $0x10] sm:$0xff]   ;;  %v1250_v14 = vld [vmem:[%s1595_s8 + $0x18] sm:$0xff]   ;;  %p1319_p4 = scmp.ne.s32.totalorder %s1696_s9, %s1318_s26  ;;  %s1322_s4 = sshll.u32 %s1410_s21, 4  ;;  %s1323_s4 = int_to_ptr.vmem [resolvable:$false] %s1322_s4 }
  0x5f   : > { %v1249_v13 = vld [vmem:[%s1595_s8 + $0x50] sm:$0xff]   ;;  %v1251_v15 = vld [vmem:[%s1595_s8 + $0x58] sm:$0xff]   ;;  %v1252_v16 = vld [vmem:[%s1595_s8 + $0x20] sm:$0xff]   ;;  %s1324_s6 = scalar_lea.vmem %s1323_s4, 8192  ;;  %p1325_p12 = scmp.lt.s32.totalorder %s1696_s9, %s1323_s4 }
  0x60   : > { %1098 = vmatpush3.bf16.msra.mxu0 %v1237_v1  ;;  %1152 = vmatpush3.bf16.msra.mxu1 %v1237_v1  ;;  %v1253_v17 = vld [vmem:[%s1595_s8 + $0x60] sm:$0xff]   ;;  %v1254_v18 = vld [vmem:[%s1595_s8 + $0x28] sm:$0xff]   ;;  %v1256_v20 = vld [vmem:[%s1595_s8 + $0x30] sm:$0xff]   ;;  %p1320_p6 = pnand %p1319_p4, %p1532_p10  ;;  %p1326_p11 = scmp.lt.s32.totalorder %s1324_s6, %s1318_s26 }
  0x61   : > { %1099 = vmatprep.subr.bf16.mxu0 %v1238_v2  ;;  %1145 = vmatprep.subr.bf16.mxu1 %v1238_v2  ;;  %v1255_v19 = vld [vmem:[%s1595_s8 + $0x68] sm:$0xff]   ;;  %v1257_v21 = vld [vmem:[%s1595_s8 + $0x70] sm:$0xff]   ;;  %v1258_v22 = vld [vmem:[%s1595_s8 + $0x38] sm:$0xff]  }
  0x62   : > { %v1259_v23 = vld [vmem:[%s1595_s8 + $0x78] sm:$0xff]   ;;  %v1624_v24 = vld [vmem:[%s1751_s2] ss:$0 sm:$0xff]  ;;  %p1321_p8 = pneg %p1320_p6  ;;  %p1327_p0 = por %p1326_p11, %p1325_p12 }
  0x64   : > { %1100 = vmatpush3.bf16.msra.mxu0 %v1238_v2  ;;  %1153 = vmatpush3.bf16.msra.mxu1 %v1238_v2  ;;  %p1328_p5 = pnand %p1327_p0, %p1321_p8 }
  0x65   : > { %1101 = vmatprep.subr.bf16.mxu0 %v1239_v3  ;;  %1146 = vmatprep.subr.bf16.mxu1 %v1239_v3 }
  0x68   : > { %1102 = vmatpush3.bf16.msra.mxu0 %v1239_v3  ;;  %1154 = vmatpush3.bf16.msra.mxu1 %v1239_v3 }
  0x69   : > { %1103 = vmatprep.subr.bf16.mxu0 %v1240_v6  ;;  %1147 = vmatprep.subr.bf16.mxu1 %v1240_v6 }
  0x6c   : > { %1104 = vmatpush3.bf16.msra.mxu0 %v1240_v6  ;;  %1155 = vmatpush3.bf16.msra.mxu1 %v1240_v6 }
  0x6d   : > { %1105 = vmatprep.subr.bf16.mxu0 %v1241_v7  ;;  %1148 = vmatprep.subr.bf16.mxu1 %v1241_v7 }
  0x70   : > { %1106 = vmatpush3.bf16.msra.mxu0 %v1241_v7  ;;  %1156 = vmatpush3.bf16.msra.mxu1 %v1241_v7 }
  0x71   : > { %1107 = vmatprep.subr.bf16.mxu0 %v1242_v8  ;;  %1149 = vmatprep.subr.bf16.mxu1 %v1242_v8 }
  0x74   : > { %1108 = vmatpush3.bf16.msra.mxu0 %v1242_v8  ;;  %1157 = vmatpush3.bf16.msra.mxu1 %v1242_v8 }
  0x75   : > { %1109 = vmatprep.subr.bf16.mxu0 %v1243_v9  ;;  %1150 = vmatprep.subr.bf16.mxu1 %v1243_v9 }
  0x78   : > { %1110 = vmatpush3.bf16.msra.mxu0 %v1243_v9  ;;  %1158 = vmatpush3.bf16.msra.mxu1 %v1243_v9 }
  0x7b   : > { %1112 = vmatmul.mubr.bf16.vlgmr.msra.gmra.mrb[0].mxu0 %v1246_v10  ;;  %1128 = vmatmul.mubr.bf16.vlgmr.msra.gmra.mrb[0].mxu1 %v1247_v11 }
  0x7c   : > { %1115 = vmatprep.mubr.bf16.mxu0 %v1248_v12  ;;  %1131 = vmatprep.mubr.bf16.mxu1 %v1249_v13 }
  0x83   : > { %1116 = vmatmul.mubr.bf16.gmra.mrb[4].mxu0 %v1250_v14  ;;  %1132 = vmatmul.mubr.bf16.gmra.mrb[4].mxu1 %v1251_v15 }
  0x84   : > { %1119 = vmatprep.mubr.bf16.mxu0 %v1252_v16  ;;  %1135 = vmatprep.mubr.bf16.mxu1 %v1253_v17 }
  0x8b   : > { %1120 = vmatmul.mubr.bf16.gmra.mrb[8].mxu0 %v1254_v18  ;;  %1136 = vmatmul.mubr.bf16.gmra.mrb[8].mxu1 %v1255_v19 }
  0x8c   : > { %1123 = vmatprep.mubr.bf16.mxu0 %v1256_v20  ;;  %1139 = vmatprep.mubr.bf16.mxu1 %v1257_v21 }
  0x93   : > { %1124 = vmatmul.mubr.bf16.gmra.mrb[12].mxu0 %v1258_v22  ;;  %1140 = vmatmul.mubr.bf16.gmra.mrb[12].mxu1 %v1259_v23 }
 0x14e   : > { %v1113_v25 = vpop.f32.mrb[0].mxu0  ;;  %v1129_v26 = vpop.f32.mrb[0].mxu1 }
 0x14f   : > { %v760_v27 = vadd.f32 %v1113_v25, %v1624_v24  ;;  %v776_v28 = vadd.f32 %v1129_v26, %v1624_v24  ;;  %v525_v29 = vpop.f32.mrb[1].mxu0  ;;  %v589_v30 = vpop.f32.mrb[1].mxu1 }
 0x150   : > { %v758_v31 = vadd.f32 %v1624_v24, %v525_v29  ;;  %v774_v32 = vadd.f32 %v1624_v24, %v589_v30  ;;  %v1114_v33 = vpop.f32.mrb[2].mxu0  ;;  %v1130_v34 = vpop.f32.mrb[2].mxu1 }
 0x151   : > { %vm792_vm0 = vcmp.gt.f32.partialorder %v760_v27, 0.0  ;;  %v824_v35 = vmul.f32 0.2, %v760_v27  ;;  %vm808_vm1 = vcmp.gt.f32.partialorder %v776_v28, 0.0  ;;  %v840_v36 = vmul.f32 0.2, %v776_v28 }
 0x152   : > { %vm790_vm2 = vcmp.gt.f32.partialorder %v758_v31, 0.0  ;;  %v822_v37 = vmul.f32 0.2, %v758_v31  ;;  %vm806_vm3 = vcmp.gt.f32.partialorder %v774_v32, 0.0  ;;  %v838_v38 = vmul.f32 0.2, %v774_v32 }
 0x153   : > { %v856_v39 = vsel %vm792_vm0, %v760_v27, %v824_v35  ;;  %v872_v40 = vsel %vm808_vm1, %v776_v28, %v840_v36  ;;  %v761_v41 = vadd.f32 %v1114_v33, %v1624_v24  ;;  %v777_v42 = vadd.f32 %v1130_v34, %v1624_v24  ;;  %v528_v43 = vpop.f32.mrb[3].mxu0  ;;  %v592_v44 = vpop.f32.mrb[3].mxu1 }
 0x154   : > { %888 = vst [vmem:[%s1633_s10 + $0x10] sm:$0xff] %v856_v39  ;;  %904 = vst [vmem:[%s1633_s10 + $0x90] sm:$0xff] %v872_v40  ;;  %v854_v45 = vsel %vm790_vm2, %v758_v31, %v822_v37  ;;  %v870_v46 = vsel %vm806_vm3, %v774_v32, %v838_v38  ;;  %v759_v47 = vadd.f32 %v1624_v24, %v528_v43 }
 0x155   : > { %v775_v48 = vadd.f32 %v1624_v24, %v592_v44  ;;  %886 = vst [vmem:[%s1633_s10] sm:$0xff] %v854_v45  ;;  %902 = vst [vmem:[%s1633_s10 + $0x80] sm:$0xff] %v870_v46  ;;  %vm793_vm4 = vcmp.gt.f32.partialorder %v761_v41, 0.0  ;;  %v825_v49 = vmul.f32 0.2, %v761_v41  ;;  %vm809_vm5 = vcmp.gt.f32.partialorder %v777_v42, 0.0 }
 0x156   : > { %v841_v50 = vmul.f32 0.2, %v777_v42  ;;  %vm791_vm6 = vcmp.gt.f32.partialorder %v759_v47, 0.0  ;;  %v823_v51 = vmul.f32 0.2, %v759_v47  ;;  %v1117_v55 = vpop.f32.mrb[4].mxu0 }
 0x157   : > { %vm807_vm7 = vcmp.gt.f32.partialorder %v775_v48, 0.0  ;;  %v839_v52 = vmul.f32 0.2, %v775_v48  ;;  %v857_v53 = vsel %vm793_vm4, %v761_v41, %v825_v49  ;;  %v1133_v56 = vpop.f32.mrb[4].mxu1  ;;  %v764_v59 = vadd.f32 %v1117_v55, %v1624_v24  ;;  %v541_v61 = vpop.f32.mrb[5].mxu0 }
 0x158   : > { %v873_v54 = vsel %vm809_vm5, %v777_v42, %v841_v50  ;;  %889 = vst [vmem:[%s1633_s10 + $0x18] sm:$0xff] %v857_v53  ;;  %v855_v57 = vsel %vm791_vm6, %v759_v47, %v823_v51  ;;  %v780_v60 = vadd.f32 %v1133_v56, %v1624_v24  ;;  %v605_v62 = vpop.f32.mrb[5].mxu1  ;;  %v762_v63 = vadd.f32 %v1624_v24, %v541_v61  ;;  %v1118_v1 = vpop.f32.mrb[6].mxu0 }
 0x159   : > { %905 = vst [vmem:[%s1633_s10 + $0x98] sm:$0xff] %v873_v54  ;;  %v871_v58 = vsel %vm807_vm7, %v775_v48, %v839_v52  ;;  %887 = vst [vmem:[%s1633_s10 + $0x8] sm:$0xff] %v855_v57  ;;  %v778_v0 = vadd.f32 %v1624_v24, %v605_v62  ;;  %v1134_v2 = vpop.f32.mrb[6].mxu1  ;;  %vm796_vm8 = vcmp.gt.f32.partialorder %v764_v59, 0.0  ;;  %v828_v3 = vmul.f32 0.2, %v764_v59 }
 0x15a   : > { %903 = vst [vmem:[%s1633_s10 + $0x88] sm:$0xff] %v871_v58  ;;  %vm812_vm9 = vcmp.gt.f32.partialorder %v780_v60, 0.0  ;;  %v844_v4 = vmul.f32 0.2, %v780_v60  ;;  %vm794_vm10 = vcmp.gt.f32.partialorder %v762_v63, 0.0  ;;  %v765_v9 = vadd.f32 %v1118_v1, %v1624_v24  ;;  %v544_v11 = vpop.f32.mrb[7].mxu0 }
 0x15b   : > { %v826_v5 = vmul.f32 0.2, %v762_v63  ;;  %vm810_vm11 = vcmp.gt.f32.partialorder %v778_v0, 0.0  ;;  %v842_v6 = vmul.f32 0.2, %v778_v0  ;;  %v860_v7 = vsel %vm796_vm8, %v764_v59, %v828_v3  ;;  %v608_v12 = vpop.f32.mrb[7].mxu1 }
 0x15c   : > { %v876_v8 = vsel %vm812_vm9, %v780_v60, %v844_v4  ;;  %v781_v10 = vadd.f32 %v1134_v2, %v1624_v24  ;;  %892 = vst [vmem:[%s1633_s10 + $0x30] sm:$0xff] %v860_v7  ;;  %v763_v15 = vadd.f32 %v1624_v24, %v544_v11  ;;  %v779_v16 = vadd.f32 %v1624_v24, %v608_v12 }
 0x15d   : > { %908 = vst [vmem:[%s1633_s10 + $0xb0] sm:$0xff] %v876_v8  ;;  %v858_v13 = vsel %vm794_vm10, %v762_v63, %v826_v5  ;;  %v874_v14 = vsel %vm810_vm11, %v778_v0, %v842_v6  ;;  %vm797_vm12 = vcmp.gt.f32.partialorder %v765_v9, 0.0  ;;  %v829_v17 = vmul.f32 0.2, %v765_v9 }
 0x15e   : > { %890 = vst [vmem:[%s1633_s10 + $0x20] sm:$0xff] %v858_v13  ;;  %906 = vst [vmem:[%s1633_s10 + $0xa0] sm:$0xff] %v874_v14  ;;  %vm813_vm13 = vcmp.gt.f32.partialorder %v781_v10, 0.0  ;;  %v845_v18 = vmul.f32 0.2, %v781_v10  ;;  %vm795_vm14 = vcmp.gt.f32.partialorder %v763_v15, 0.0 }
 0x15f   : > { %v827_v19 = vmul.f32 0.2, %v763_v15  ;;  %vm811_vm15 = vcmp.gt.f32.partialorder %v779_v16, 0.0  ;;  %v843_v20 = vmul.f32 0.2, %v779_v16  ;;  %v861_v21 = vsel %vm797_vm12, %v765_v9, %v829_v17  ;;  %v1121_v23 = vpop.f32.mrb[8].mxu0 }
 0x160   : > { %v877_v22 = vsel %vm813_vm13, %v781_v10, %v845_v18  ;;  %v1137_v25 = vpop.f32.mrb[8].mxu1  ;;  %893 = vst [vmem:[%s1633_s10 + $0x38] sm:$0xff] %v861_v21  ;;  %v768_v28 = vadd.f32 %v1121_v23, %v1624_v24  ;;  %v557_v30 = vpop.f32.mrb[9].mxu0 }
 0x161   : > { %909 = vst [vmem:[%s1633_s10 + $0xb8] sm:$0xff] %v877_v22  ;;  %v859_v26 = vsel %vm795_vm14, %v763_v15, %v827_v19  ;;  %v875_v27 = vsel %vm811_vm15, %v779_v16, %v843_v20  ;;  %v784_v29 = vadd.f32 %v1137_v25, %v1624_v24  ;;  %v621_v31 = vpop.f32.mrb[9].mxu1  ;;  %v766_v32 = vadd.f32 %v1624_v24, %v557_v30  ;;  %v1122_v34 = vpop.f32.mrb[10].mxu0 }
 0x162   : > { %891 = vst [vmem:[%s1633_s10 + $0x28] sm:$0xff] %v859_v26  ;;  %907 = vst [vmem:[%s1633_s10 + $0xa8] sm:$0xff] %v875_v27  ;;  %v782_v33 = vadd.f32 %v1624_v24, %v621_v31  ;;  %v1138_v35 = vpop.f32.mrb[10].mxu1  ;;  %vm800_vm0 = vcmp.gt.f32.partialorder %v768_v28, 0.0  ;;  %v832_v36 = vmul.f32 0.2, %v768_v28  ;;  %v769_v42 = vadd.f32 %v1122_v34, %v1624_v24 }
 0x163   : > { %vm816_vm1 = vcmp.gt.f32.partialorder %v784_v29, 0.0  ;;  %v848_v37 = vmul.f32 0.2, %v784_v29  ;;  %vm798_vm2 = vcmp.gt.f32.partialorder %v766_v32, 0.0  ;;  %v830_v38 = vmul.f32 0.2, %v766_v32 }
 0x164   : > { %vm814_vm3 = vcmp.gt.f32.partialorder %v782_v33, 0.0  ;;  %v846_v39 = vmul.f32 0.2, %v782_v33  ;;  %v864_v40 = vsel %vm800_vm0, %v768_v28, %v832_v36  ;;  %v785_v43 = vadd.f32 %v1138_v35, %v1624_v24  ;;  %v560_v44 = vpop.f32.mrb[11].mxu0  ;;  %v624_v45 = vpop.f32.mrb[11].mxu1 }
 0x165   : > { %v880_v41 = vsel %vm816_vm1, %v784_v29, %v848_v37  ;;  %896 = vst [vmem:[%s1633_s10 + $0x50] sm:$0xff] %v864_v40  ;;  %v862_v46 = vsel %vm798_vm2, %v766_v32, %v830_v38  ;;  %v767_v48 = vadd.f32 %v1624_v24, %v560_v44  ;;  %v783_v49 = vadd.f32 %v1624_v24, %v624_v45 }
 0x166   : > { %912 = vst [vmem:[%s1633_s10 + $0xd0] sm:$0xff] %v880_v41  ;;  %v878_v47 = vsel %vm814_vm3, %v782_v33, %v846_v39  ;;  %v1125_v50 = vpop.f32.mrb[12].mxu0  ;;  %v1141_v51 = vpop.f32.mrb[12].mxu1  ;;  %894 = vst [vmem:[%s1633_s10 + $0x40] sm:$0xff] %v862_v46  ;;  %vm801_vm4 = vcmp.gt.f32.partialorder %v769_v42, 0.0  ;;  %vm817_vm5 = vcmp.gt.f32.partialorder %v785_v43, 0.0 }
 0x167   : > { %910 = vst [vmem:[%s1633_s10 + $0xc0] sm:$0xff] %v878_v47  ;;  %v833_v52 = vmul.f32 0.2, %v769_v42  ;;  %v849_v53 = vmul.f32 0.2, %v785_v43  ;;  %vm799_vm6 = vcmp.gt.f32.partialorder %v767_v48, 0.0  ;;  %v772_v58 = vadd.f32 %v1125_v50, %v1624_v24 }
 0x168   : > { %v831_v54 = vmul.f32 0.2, %v767_v48  ;;  %vm815_vm7 = vcmp.gt.f32.partialorder %v783_v49, 0.0  ;;  %v847_v55 = vmul.f32 0.2, %v783_v49  ;;  %v788_v59 = vadd.f32 %v1141_v51, %v1624_v24  ;;  %v573_v60 = vpop.f32.mrb[13].mxu0 }
 0x169   : > { %v865_v56 = vsel %vm801_vm4, %v769_v42, %v833_v52  ;;  %v881_v57 = vsel %vm817_vm5, %v785_v43, %v849_v53  ;;  %v637_v61 = vpop.f32.mrb[13].mxu1  ;;  %v770_v0 = vadd.f32 %v1624_v24, %v573_v60  ;;  %v1126_v2 = vpop.f32.mrb[14].mxu0  ;;  %vm804_vm8 = vcmp.gt.f32.partialorder %v772_v58, 0.0 }
 0x16a   : > { %897 = vst [vmem:[%s1633_s10 + $0x58] sm:$0xff] %v865_v56  ;;  %913 = vst [vmem:[%s1633_s10 + $0xd8] sm:$0xff] %v881_v57  ;;  %v863_v62 = vsel %vm799_vm6, %v767_v48, %v831_v54  ;;  %v879_v63 = vsel %vm815_vm7, %v783_v49, %v847_v55  ;;  %v786_v1 = vadd.f32 %v1624_v24, %v637_v61  ;;  %v1142_v3 = vpop.f32.mrb[14].mxu1  ;;  %v836_v4 = vmul.f32 0.2, %v772_v58  ;;  %v576_v12 = vpop.f32.mrb[15].mxu0 }
 0x16b   : > { %895 = vst [vmem:[%s1633_s10 + $0x48] sm:$0xff] %v863_v62  ;;  %911 = vst [vmem:[%s1633_s10 + $0xc8] sm:$0xff] %v879_v63  ;;  %vm820_vm9 = vcmp.gt.f32.partialorder %v788_v59, 0.0  ;;  %v852_v5 = vmul.f32 0.2, %v788_v59  ;;  %vm802_vm10 = vcmp.gt.f32.partialorder %v770_v0, 0.0  ;;  %v773_v10 = vadd.f32 %v1126_v2, %v1624_v24 }
 0x16c   : > { %v834_v6 = vmul.f32 0.2, %v770_v0  ;;  %vm818_vm11 = vcmp.gt.f32.partialorder %v786_v1, 0.0  ;;  %v850_v7 = vmul.f32 0.2, %v786_v1  ;;  %v868_v8 = vsel %vm804_vm8, %v772_v58, %v836_v4  ;;  %v640_v13 = vpop.f32.mrb[15].mxu1 }
 0x16d   : > { %v884_v9 = vsel %vm820_vm9, %v788_v59, %v852_v5  ;;  %v789_v11 = vadd.f32 %v1142_v3, %v1624_v24  ;;  %900 = vst [vmem:[%s1633_s10 + $0x70] sm:$0xff] %v868_v8  ;;  %v771_v16 = vadd.f32 %v1624_v24, %v576_v12  ;;  %v787_v17 = vadd.f32 %v1624_v24, %v640_v13 }
 0x16e   : > { %916 = vst [vmem:[%s1633_s10 + $0xf0] sm:$0xff] %v884_v9  ;;  %v866_v14 = vsel %vm802_vm10, %v770_v0, %v834_v6  ;;  %v882_v15 = vsel %vm818_vm11, %v786_v1, %v850_v7  ;;  %vm805_vm12 = vcmp.gt.f32.partialorder %v773_v10, 0.0  ;;  %v837_v18 = vmul.f32 0.2, %v773_v10 }
 0x16f   : > { %898 = vst [vmem:[%s1633_s10 + $0x60] sm:$0xff] %v866_v14  ;;  %914 = vst [vmem:[%s1633_s10 + $0xe0] sm:$0xff] %v882_v15  ;;  %vm821_vm13 = vcmp.gt.f32.partialorder %v789_v11, 0.0  ;;  %v853_v19 = vmul.f32 0.2, %v789_v11  ;;  %vm803_vm14 = vcmp.gt.f32.partialorder %v771_v16, 0.0 }
 0x170   : > { %v835_v20 = vmul.f32 0.2, %v771_v16  ;;  %vm819_vm15 = vcmp.gt.f32.partialorder %v787_v17, 0.0  ;;  %v851_v21 = vmul.f32 0.2, %v787_v17  ;;  %v869_v24 = vsel %vm805_vm12, %v773_v10, %v837_v18 }
 0x171   : > { %v885_v22 = vsel %vm821_vm13, %v789_v11, %v853_v19  ;;  %901 = vst [vmem:[%s1633_s10 + $0x78] sm:$0xff] %v869_v24 }
 0x172   : > { %917 = vst [vmem:[%s1633_s10 + $0xf8] sm:$0xff] %v885_v22  ;;  %v867_v23 = vsel %vm803_vm14, %v771_v16, %v835_v20  ;;  %v883_v25 = vsel %vm819_vm15, %v787_v17, %v851_v21 }
 0x173   : > { %899 = vst [vmem:[%s1633_s10 + $0x68] sm:$0xff] %v867_v23  ;;  %915 = vst [vmem:[%s1633_s10 + $0xe8] sm:$0xff] %v883_v25 }
 0x174   : > { %1331 = shalt.err (!%p1328_p5)
}
 0x175   : > { %s1332_s29 = scalar_lea.hbm %s1694_s19, 4096  ;;  %s1336_s20 = scalar_lea.hbm %s1752_s3, 8192 }
 0x176   : > { %p1333_p9 = scmp.ne.s32.totalorder %s1694_s19, %s1332_s29  ;;  %p1337_p3 = scmp.lt.u32.totalorder %s1694_s19, %s1752_s3 }
 0x177   : > { %p1338_p7 = scmp.lt.u32.totalorder %s1336_s20, %s1332_s29  ;;  %p1340_p4 = scmp.lt.u32.totalorder %s1332_s29, %s1694_s19 }
 0x178   : > { %p1334_p1 = pnand %p1333_p9, %p1532_p10 }
 0x179   : > { %p1339_p13 = por %p1338_p7, %p1337_p3 }
 0x17a   : > { %p1335_p2 = pneg %p1334_p1 }
 0x17b   : > { %p1341_p6 = por %p1340_p4, %p1339_p13 }
 0x17d   : > { %p1342_p8 = pnand %p1341_p6, %p1335_p2 }
 0x17f   : > { %1345 = shalt.err (!%p1342_p8)
}
 0x180   : > { %s1411_s10 = smov 128   ;;  %s1412_s11 = smov 8  }
 0x181   : > { %1165 = dma.vmem_to_hbm [thread:$0]  (%p1532_p10), %s1696_s9, 4096, %s1694_s19, %s919_s25, %s1411_s10, %s1411_s10, %s1412_s11  }
 0x182 PF: > { %s947_s15 = sand.u32 1, %s1384_s12   ;;  %p1770_p12 = scmp.ne.s32.totalorder %s1760_s23, 0 }
 0x183   : > { %p1771_p11 = scmp.ge.s32.totalorder %s1404_s17, 2  ;;  %s948_s18 = scalar_lea.sflag [#allocation5], %s947_s15 }
 0x185   : > { %p1176_p0 = pnand %p1771_p11, %p1770_p12 }
 0x187   : > { %1379 = dma.done.wait (!%p1176_p0), %s948_s18, 4096  }
 0x188   : > { %1381 = vsyncadd (!%p1176_p0), %s948_s18, 4294963200  ;;  %s20_s17 = sadd.s32 1, %s1404_s17   ;;  %s1772_s12 = smov %s1388_s13 }
 0x189   : > { %p17_p5 = scmp.ge.s32.totalorder %s20_s17, 4   ;;  %s1773_s13 = smov %s1392_s14 }
 0x18a   : > { %s1774_s14 = smov %s1541_s5  ;;  %s1775_s15 = smov %s1400_s16 }
 0x18b   : > { %s1776_s16 = smov %s1778_s28  ;;  %19 = sbr.rel (!%p17_p5) target bundleno = 7 (0x7), region = 90 }
 0x192   :  { %953 = vsyncpa [#allocation4], 1 }
 0x193   :  { %955 = vsyncpa [#allocation4 + $0x1], 1 }
 0x194   :  { %956 = vsyncpa [#allocation7], 1 }
 0x195   :  { %957 = vsyncpa [#allocation5], 1 }
 0x196   :  { %959 = vsyncpa [#allocation5 + $0x1], 1 }

</bundles_post_ra>
